<compile_context>
chip_gen: v7x
topology: tpu7x:2x2x1
jax: 0.10.0
libtpu: 0.0.40
codegen_flags: <defaults>
</compile_context>

<pallas_src>
import functools

import jax
import jax.numpy as jnp
import numpy as np
from jax.experimental import pallas as pl
from jax.experimental.pallas import tpu as pltpu


# ---------------------------------------------------------------------------
# Parameter folding (wrapper-side, exact algebra — no numerical change).
# ---------------------------------------------------------------------------
def _fold_params(params):
    """Fold theta/phi + concat_project into one fused, lane-dense projection.

    Returns (W_all (C,P) f32, b_all (1,P) f32, IC, P) with column layout:
      [0:IC]  -> g projection (w_g / b_g)
      [IC]    -> u = w_theta @ w1  (theta-side rank-1 score; all score biases
                 b_theta@w1 + b_phi@w2 + b_cp folded into this column's bias)
      [IC+1]  -> v = w_phi @ w2    (phi-side rank-1 score)
      [IC+2]  -> zero weights, bias 1.0  => proj[:,IC+2] == 1, so the softmax
                 denominator falls out of the AV matmul (MXU) for free.
      rest    -> zero padding up to a multiple of 128 lanes.
    """
    C, IC = params["w_g"].shape
    P = ((IC + 3 + 127) // 128) * 128      # lane-dense fused output width

    w1 = params["w_cp"][:IC]               # acts on theta channels
    w2 = params["w_cp"][IC:]               # acts on phi channels
    u = params["w_theta"] @ w1             # (C,)
    v = params["w_phi"] @ w2               # (C,)
    bias_f = params["b_theta"] @ w1 + params["b_phi"] @ w2 + params["b_cp"]

    W_all = jnp.zeros((C, P), jnp.float32)
    W_all = W_all.at[:, :IC].set(params["w_g"])
    W_all = W_all.at[:, IC].set(u)
    W_all = W_all.at[:, IC + 1].set(v)

    b_all = jnp.zeros((1, P), jnp.float32)
    b_all = b_all.at[0, :IC].set(params["b_g"])
    b_all = b_all.at[0, IC].set(bias_f)
    b_all = b_all.at[0, IC + 2].set(1.0)   # ones column -> MXU softmax denom
    return W_all, b_all, IC, P


# ---------------------------------------------------------------------------
# Generation-aware sizing helpers
# ---------------------------------------------------------------------------
def _vmem_limit_bytes(default=64 * 1024 * 1024):
    """~75% of physical VMEM, capped at 100 MiB (headroom for Mosaic scratch)."""
    try:
        cap = int(pltpu.get_tpu_info().vmem_capacity_bytes)
        return min((cap * 3) // 4, 100 * 1024 * 1024)
    except Exception:
        return default


def _pick_row_tile(n, p, target, vmem_budget):
    """Largest multiple-of-8 divisor of n that is <= target and fits VMEM."""
    cands = [d for d in range(8, n + 1, 8) if n % d == 0]
    if not cands:
        return n  # awkward / tiny n: single full tile (full-dim blocks are legal)

    def fits(t):
        # double-buffered adj (int8) + ~6 f32 (t,n) elementwise temporaries
        # + double-buffered g (bf16, n x p) + double-buffered out (bf16, t x p)
        need = 2 * t * n + 6 * t * n * 4 + 2 * n * p * 2 + 2 * t * p * 2
        return need <= 0.7 * vmem_budget

    good = [d for d in cands if d <= target and fits(d)]
    if good:
        return max(good)
    small = [d for d in cands if fits(d)]
    return min(small) if small else min(cands)


# ---------------------------------------------------------------------------
# Kernels
# ---------------------------------------------------------------------------
def _project_kernel(x_ref, w_ref, b_ref, g_ref, tp_ref, pp_ref, *, ic):
    """Per-batch fused lane-dense projection: proj = x @ W_all + b_all."""
    proj = jnp.dot(x_ref[0], w_ref[...],
                   preferred_element_type=jnp.float32) + b_ref[...]   # (N, P) f32
    g_ref[0] = proj.astype(jnp.bfloat16)                  # AV-matmul operand (+ ones col)
    tp_ref[0] = proj[:, ic:ic + 1]                        # theta-side score (+ folded bias)
    pp_ref[0] = jnp.transpose(proj[:, ic + 1:ic + 2])     # phi-side score row (1, N)


def _attn_kernel(g_ref, tp_ref, pp_ref, adj_ref, o_ref, *, ic, exp_bf16):
    """One (tq, N) row tile of score / mask / softmax / AV."""
    f = tp_ref[0] + pp_ref[0]                              # (tq, N) rank-1 score
    e = jnp.maximum(f, 0.2 * f)                            # LeakyReLU(0.2)

    # torch semantics: attention = where(adj > 0, -9e15, e)
    att = jnp.where(adj_ref[...] > 0, jnp.float32(-9.0e15), e)

    # numerically stable softmax over the key axis; exp in bf16 on v6e/v7x
    m = jnp.max(att, axis=-1, keepdims=True)
    z = att - m
    if exp_bf16:
        p = jnp.exp(z.astype(jnp.bfloat16))                # bf16 EUP, feeds MXU directly
    else:
        p = jnp.exp(z).astype(jnp.bfloat16)                # v5e and older: f32 EUP

    # y = p @ g  (bf16 MXU operands, f32 accumulation, lane-dense output).
    # The ones-column of g yields the softmax denominator s for free.
    y = jnp.dot(p, g_ref[0], preferred_element_type=jnp.float32)      # (tq, P) f32
    s = y[:, ic + 2:ic + 3]                                            # == sum_j p[i,j]
    o_ref[0] = (y * pl.reciprocal(s, approx=True)).astype(jnp.bfloat16)


# ---------------------------------------------------------------------------
# Wrapper
# ---------------------------------------------------------------------------
def nonlocal_block_pallas(x_nchw, params, adj, *, tq=None):
    """Forward of _NonLocalBlock.  x_nchw: (B, C, H, W) -> (B, IC, H, W) f32."""
    B, C, H, W = x_nchw.shape
    N = H * W

    W_all, b_all, IC, P = _fold_params(params)
    W_bf16 = W_all.astype(jnp.bfloat16)

    kind = jax.devices()[0].device_kind.lower()
    exp_bf16 = ("v6" in kind) or ("v7" in kind)            # bf16 EUP only on v6e/v7x
    vmem_limit = _vmem_limit_bytes()
    if tq is None:
        target = 256 if "v7" in kind else 512
        tq = _pick_row_tile(N, P, target, vmem_limit)
    assert N % tq == 0, "row tile must divide N"
    R = N // tq

    # glue: NCHW -> (B, N, C), bf16 MXU operand; adjacency as int8 mask
    x = jnp.transpose(x_nchw.reshape(B, C, N), (0, 2, 1)).astype(jnp.bfloat16)
    adj_i8 = (adj > 0).astype(jnp.int8)

    # --- stage 1: per-batch fused projection (hoisted out of the attention) --
    g, tp, pp = pl.pallas_call(
        functools.partial(_project_kernel, ic=IC),
        out_shape=(jax.ShapeDtypeStruct((B, N, P), jnp.bfloat16),
                   jax.ShapeDtypeStruct((B, N, 1), jnp.float32),
                   jax.ShapeDtypeStruct((B, 1, N), jnp.float32)),
        grid=(B,),
        in_specs=[
            pl.BlockSpec((1, N, C), lambda b: (b, 0, 0)),
            pl.BlockSpec((C, P), lambda b: (0, 0)),
            pl.BlockSpec((1, P), lambda b: (0, 0)),
        ],
        out_specs=(
            pl.BlockSpec((1, N, P), lambda b: (b, 0, 0)),
            pl.BlockSpec((1, N, 1), lambda b: (b, 0, 0)),
            pl.BlockSpec((1, 1, N), lambda b: (b, 0, 0)),
        ),
        compiler_params=pltpu.CompilerParams(
            dimension_semantics=("parallel",),
            vmem_limit_bytes=vmem_limit),
    )(x, W_bf16, b_all)

    # --- stage 2: row-tiled score / mask / softmax / AV (fully parallel grid) --
    # (on v5e, pipeline_mode=pl.Buffered(3) on the adj spec could further hide
    #  DMA jitter; left at the default double-buffering here.)
    y = pl.pallas_call(
        functools.partial(_attn_kernel, ic=IC, exp_bf16=exp_bf16),
        out_shape=jax.ShapeDtypeStruct((B, N, P), jnp.bfloat16),
        grid=(B, R),
        in_specs=[
            pl.BlockSpec((1, N, P), lambda b, r: (b, 0, 0)),   # g (DMAed once per batch)
            pl.BlockSpec((1, tq, 1), lambda b, r: (b, r, 0)),  # theta-side score column
            pl.BlockSpec((1, 1, N), lambda b, r: (b, 0, 0)),   # phi-side score row
            pl.BlockSpec((tq, N), lambda b, r: (r, 0)),        # adjacency row tile (int8)
        ],
        out_specs=pl.BlockSpec((1, tq, P), lambda b, r: (b, r, 0)),
        compiler_params=pltpu.CompilerParams(
            dimension_semantics=("parallel", "parallel"),
            vmem_limit_bytes=vmem_limit),
    )(g, tp, pp, adj_i8)

    # strip lane padding, glue back to NCHW, restore module f32 dtype
    y = y[:, :, :IC].astype(jnp.float32)
    return jnp.transpose(y, (0, 2, 1)).reshape(B, IC, H, W)


# ---------------------------------------------------------------------------
# References
# ---------------------------------------------------------------------------
def nonlocal_block_ref(x_nchw, params, adj):
    """Pure-JAX f32 reference mirroring the torch forward exactly."""
    B, C, H, W = x_nchw.shape
    N = H * W
    IC = params["w_g"].shape[1]
    xf = jnp.transpose(x_nchw.reshape(B, C, N), (0, 2, 1))          # (B, N, C)

    g_x = xf @ params["w_g"] + params["b_g"]
    theta = xf @ params["w_theta"] + params["b_theta"]
    phi = xf @ params["w_phi"] + params["b_phi"]

    w1 = params["w_cp"][:IC]
    w2 = params["w_cp"][IC:]
    f = (theta @ w1)[:, :, None] + (phi @ w2)[:, None, :] + params["b_cp"]
    e = jnp.where(f > 0, f, 0.2 * f)
    att = jnp.where(adj > 0, jnp.float32(-9.0e15), e)
    att = jax.nn.softmax(att, axis=-1)
    y = att @ g_x
    return jnp.transpose(y, (0, 2, 1)).reshape(B, IC, H, W)


def nonlocal_block_ref_matched(x_nchw, params, adj, *, exp_bf16):
    """Reference at the kernel's precision (bf16 MXU / f32 acc / ones-col sum)."""
    B, C, H, W = x_nchw.shape
    N = H * W
    W_all, b_all, IC, P = _fold_params(params)
    xf = jnp.transpose(x_nchw.reshape(B, C, N), (0, 2, 1)).astype(jnp.bfloat16)
    proj = jnp.einsum("bnc,cp->bnp", xf, W_all.astype(jnp.bfloat16),
                      preferred_element_type=jnp.float32) + b_all
    g = proj.astype(jnp.bfloat16)                          # includes the ones column
    f = proj[..., IC][:, :, None] + proj[..., IC + 1][:, None, :]
    e = jnp.maximum(f, 0.2 * f)
    att = jnp.where(adj > 0, jnp.float32(-9.0e15), e)
    m = jnp.max(att, axis=-1, keepdims=True)
    z = att - m
    p = jnp.exp(z.astype(jnp.bfloat16)) if exp_bf16 else jnp.exp(z).astype(jnp.bfloat16)
    y = jnp.einsum("bqk,bkp->bqp", p, g, preferred_element_type=jnp.float32)
    s = y[..., IC + 2:IC + 3]
    out = (y[..., :IC] / s).astype(jnp.bfloat16).astype(jnp.float32)
    return jnp.transpose(out, (0, 2, 1)).reshape(B, IC, H, W)


def init_params(key, in_channels, inter_channels):
    """Deterministic Kaiming-normal weights, zero biases (as in the module)."""
    k_g, k_t, k_p, k_cp = jax.random.split(key, 4)
    std_conv = np.sqrt(2.0 / in_channels)
    std_cp = np.sqrt(2.0 / (2 * inter_channels))
    return {
        "w_g": std_conv * jax.random.normal(k_g, (in_channels, inter_channels), jnp.float32),
        "b_g": jnp.zeros((inter_channels,), jnp.float32),
        "w_theta": std_conv * jax.random.normal(k_t, (in_channels, inter_channels), jnp.float32),
        "b_theta": jnp.zeros((inter_channels,), jnp.float32),
        "w_phi": std_conv * jax.random.normal(k_p, (in_channels, inter_channels), jnp.float32),
        "b_phi": jnp.zeros((inter_channels,), jnp.float32),
        "w_cp": std_cp * jax.random.normal(k_cp, (2 * inter_channels,), jnp.float32),
        "b_cp": jnp.zeros((), jnp.float32),
    }


if __name__ == "__main__":
    B, C, H, W = 2, 8, 8, 8          # small shapes consistent with the module
    IC = C // 2                      # inter_channels = in_channels // 2
    N = H * W

    key = jax.random.PRNGKey(0)
    kx, kadj, kw = jax.random.split(key, 3)

    x = jax.random.normal(kx, (B, C, H, W), jnp.float32)
    adj = (jax.random.uniform(kadj, (N, N)) > 0.5).astype(jnp.float32)
    params = init_params(kw, C, IC)

    out = nonlocal_block_pallas(x, params, adj)
    out = jax.block_until_ready(out)

    # Tight check against a reference at matched precision; remaining gap is
    # only the EUP approximate reciprocal + accumulation ordering.
    kind = jax.devices()[0].device_kind.lower()
    exp_bf16 = ("v6" in kind) or ("v7" in kind)
    ref_m = nonlocal_block_ref_matched(x, params, adj, exp_bf16=exp_bf16)
    np.testing.assert_allclose(np.asarray(out), np.asarray(ref_m),
                               rtol=1e-2, atol=1e-2)

    # Looser semantic check against the exact f32 torch-style reference
    # (tolerance accounts for bf16 MXU operands / bf16 output rounding).
    ref = nonlocal_block_ref(x, params, adj)
    np.testing.assert_allclose(np.asarray(out), np.asarray(ref),
                               rtol=5e-2, atol=5e-2)

    print("KERNEL_OK")
</pallas_src>

<mosaic_0001>
module attributes {stable_mosaic.version = 11 : i64} {
  func.func @_project_kernel(%arg0: i32, %arg1: memref<1x64x8xbf16, #tpu.memory_space<vmem>>, %arg2: memref<8x128xbf16, #tpu.memory_space<vmem>>, %arg3: memref<1x128xf32, #tpu.memory_space<vmem>>, %arg4: memref<1x64x128xbf16, #tpu.memory_space<vmem>>, %arg5: memref<1x64x1xf32, #tpu.memory_space<vmem>>, %arg6: memref<1x1x64xf32, #tpu.memory_space<vmem>>) attributes {dimension_semantics = [#tpu.dimension_semantics<parallel>], iteration_bounds = array<i64: 2>, scalar_prefetch = 0 : i64, scratch_operands = 0 : i64, tpu.core_type = #tpu.core_type<tc>, window_params = [{transform_indices = @transform_0, window_bounds = array<i64: 1, 64, 8>}, {pipeline_mode = #tpu.pipeline_mode<synchronous>, transform_indices = @transform_1, window_bounds = array<i64: 8, 128>}, {pipeline_mode = #tpu.pipeline_mode<synchronous>, transform_indices = @transform_2, window_bounds = array<i64: 1, 128>}, {transform_indices = @transform_3, window_bounds = array<i64: 1, 64, 128>}, {transform_indices = @transform_4, window_bounds = array<i64: 1, 64, 1>}, {transform_indices = @transform_5, window_bounds = array<i64: 1, 1, 64>}]} {
    %c0 = arith.constant 0 : index
    %c0_0 = arith.constant 0 : index
    %c0_1 = arith.constant 0 : index
    %0 = vector.load %arg1[%c0, %c0_0, %c0_1] : memref<1x64x8xbf16, #tpu.memory_space<vmem>>, vector<1x64x8xbf16>
    %1 = vector.shape_cast %0 : vector<1x64x8xbf16> to vector<64x8xbf16>
    %c0_2 = arith.constant 0 : index
    %c0_3 = arith.constant 0 : index
    %2 = vector.load %arg2[%c0_2, %c0_3] : memref<8x128xbf16, #tpu.memory_space<vmem>>, vector<8x128xbf16>
    %cst = arith.constant dense<0.000000e+00> : vector<64x128xf32>
    %3 = tpu.matmul %1, %2, %cst {dimension_numbers = #tpu.dot_dimension_numbers<[1], [0], [0], [1], [0, 0, 1, 1], [], []>} : vector<64x8xbf16>, vector<8x128xbf16>, vector<64x128xf32> -> vector<64x128xf32>
    %c0_4 = arith.constant 0 : index
    %c0_5 = arith.constant 0 : index
    %4 = vector.load %arg3[%c0_4, %c0_5] : memref<1x128xf32, #tpu.memory_space<vmem>>, vector<1x128xf32>
    %5 = vector.broadcast %4 : vector<1x128xf32> to vector<64x128xf32>
    %6 = arith.addf %3, %5 : vector<64x128xf32>
    %7 = arith.truncf %6 : vector<64x128xf32> to vector<64x128xbf16>
    %c0_6 = arith.constant 0 : index
    %c0_7 = arith.constant 0 : index
    %c0_8 = arith.constant 0 : index
    %8 = vector.load %arg4[%c0_6, %c0_7, %c0_8] : memref<1x64x128xbf16, #tpu.memory_space<vmem>>, vector<1x64x128xbf16>
    %9 = vector.shape_cast %8 : vector<1x64x128xbf16> to vector<64x128xbf16>
    %10 = vector.shape_cast %7 : vector<64x128xbf16> to vector<1x64x128xbf16>
    tpu.vector_store %arg4[%c0_6, %c0_7, %c0_8], %10 {strides = array<i32>} : memref<1x64x128xbf16, #tpu.memory_space<vmem>>, vector<1x64x128xbf16>,
    %11 = vector.extract_strided_slice %6 {offsets = [0, 4], sizes = [64, 1], strides = [1, 1]} : vector<64x128xf32> to vector<64x1xf32>
    %c0_9 = arith.constant 0 : index
    %c0_10 = arith.constant 0 : index
    %c0_11 = arith.constant 0 : index
    %12 = vector.load %arg5[%c0_9, %c0_10, %c0_11] : memref<1x64x1xf32, #tpu.memory_space<vmem>>, vector<1x64x1xf32>
    %13 = vector.shape_cast %12 : vector<1x64x1xf32> to vector<64x1xf32>
    %14 = vector.shape_cast %11 : vector<64x1xf32> to vector<1x64x1xf32>
    tpu.vector_store %arg5[%c0_9, %c0_10, %c0_11], %14 {strides = array<i32>} : memref<1x64x1xf32, #tpu.memory_space<vmem>>, vector<1x64x1xf32>,
    %15 = vector.extract_strided_slice %6 {offsets = [0, 5], sizes = [64, 1], strides = [1, 1]} : vector<64x128xf32> to vector<64x1xf32>
    %16 = tpu.transpose %15, [1, 0] : vector<64x1xf32> -> vector<1x64xf32>
    %c0_12 = arith.constant 0 : index
    %c0_13 = arith.constant 0 : index
    %c0_14 = arith.constant 0 : index
    %17 = vector.load %arg6[%c0_12, %c0_13, %c0_14] : memref<1x1x64xf32, #tpu.memory_space<vmem>>, vector<1x1x64xf32>
    %18 = vector.shape_cast %17 : vector<1x1x64xf32> to vector<1x64xf32>
    %19 = vector.shape_cast %16 : vector<1x64xf32> to vector<1x1x64xf32>
    tpu.vector_store %arg6[%c0_12, %c0_13, %c0_14], %19 {strides = array<i32>} : memref<1x1x64xf32, #tpu.memory_space<vmem>>, vector<1x1x64xf32>,
    return
  }
  func.func @transform_0(%arg0: i32) -> (i32, i32, i32) {
    %c0_i32 = arith.constant 0 : i32
    %c0_i32_0 = arith.constant 0 : i32
    %c0_i32_1 = arith.constant 0 : i32
    return %arg0, %c0_i32, %c0_i32_0 : i32, i32, i32
  }
  func.func @transform_1(%arg0: i32) -> (i32, i32) {
    %c0_i32 = arith.constant 0 : i32
    %c0_i32_0 = arith.constant 0 : i32
    %c0_i32_1 = arith.constant 0 : i32
    return %c0_i32, %c0_i32_0 : i32, i32
  }
  func.func @transform_2(%arg0: i32) -> (i32, i32) {
    %c0_i32 = arith.constant 0 : i32
    %c0_i32_0 = arith.constant 0 : i32
    %c0_i32_1 = arith.constant 0 : i32
    return %c0_i32, %c0_i32_0 : i32, i32
  }
  func.func @transform_3(%arg0: i32) -> (i32, i32, i32) {
    %c0_i32 = arith.constant 0 : i32
    %c0_i32_0 = arith.constant 0 : i32
    %c0_i32_1 = arith.constant 0 : i32
    return %arg0, %c0_i32, %c0_i32_0 : i32, i32, i32
  }
  func.func @transform_4(%arg0: i32) -> (i32, i32, i32) {
    %c0_i32 = arith.constant 0 : i32
    %c0_i32_0 = arith.constant 0 : i32
    %c0_i32_1 = arith.constant 0 : i32
    return %arg0, %c0_i32, %c0_i32_0 : i32, i32, i32
  }
  func.func @transform_5(%arg0: i32) -> (i32, i32, i32) {
    %c0_i32 = arith.constant 0 : i32
    %c0_i32_0 = arith.constant 0 : i32
    %c0_i32_1 = arith.constant 0 : i32
    return %arg0, %c0_i32, %c0_i32_0 : i32, i32, i32
  }
}

</mosaic_0001>

<bundles_post_ra>
// kernel: tpu_custom_call.1
= control target key start
LH: loop header
LB: loop body
LE: loop exit
PB: predicated region body
PF: predicated region fallthrough
CT: control target
= control target key end

     0   :  { %11 = vsyncpa [#allocation3], 0  ;;  %s1520_s0 = inlined_call_operand.hbm [shape: bf16[2,64,8], index: 0, kind: input, shape index: {}]   ;;  %s1521_s1 = inlined_call_operand.hbm [shape: bf16[8,128], index: 1, kind: input, shape index: {}]   ;;  %s1522_s2 = inlined_call_operand.hbm [shape: f32[1,128], index: 2, kind: input, shape index: {}]   ;;  %s1523_s3 = inlined_call_operand.hbm [shape: bf16[2,64,128], index: 3, kind: output, shape index: {0}]   ;;  %s1524_s4 = inlined_call_operand.hbm [shape: f32[2,64,1], index: 4, kind: output, shape index: {1}]   ;;  %s1525_s5 = inlined_call_operand.hbm [shape: f32[2,1,64], index: 5, kind: output, shape index: {2}]  }
   0x1   :  { %13 = vsyncpa [#allocation3 + $0x1], 0 }
   0x2   :  { %14 = vsyncpa [#allocation6], 0 }
   0x3   :  { %15 = vsyncpa [#allocation4], 0 }
   0x4   :  { %17 = vsyncpa [#allocation4 + $0x1], 0 }
   0x5   :  { %18 = vsyncpa [#allocation10], 0 }
   0x6   :  { %20 = vsyncpa [#allocation10 + $0x1], 0  ;;  %s1189_s18 = smov 0   ;;  %s1191_s19 = smov 0  }
   0x7   :  { %s1193_s20 = smov 0   ;;  %s1195_s21 = smov 0  }
   0x8 LB: > { %s1210_s22 = sadd.s32 4294967295, %s1143_s21   ;;  %s1531_s23 = sadd.s32 4294967294, %s1143_s21   ;;  %s1143_s21 = sphi %s1195_s21, %s1552_s21   ;;  %s1139_s20 = sphi %s1193_s20, %s1551_s20   ;;  %s1135_s19 = sphi %s1191_s19, %s1550_s19   ;;  %s1131_s18 = sphi %s1189_s18, %s1549_s18  }
   0x9   : > { %s1214_s24 = sadd.s32 1, %s1143_s21   ;;  %s33_s25 = sadd.s32 1, %s1139_s20 }
   0xa   : > { %s30_s26 = ssub.s32 %s1143_s21, %s1214_s24  ;;  %p40_p0 = scmp.ne.s32.totalorder %s1139_s20, %s1135_s19 }
   0xb   : > { %p31_p1 = scmp.eq.s32.totalorder %s30_s26, 0  ;;  %p41_p2 = scmp.eq.s32.totalorder %s1143_s21, 0 }
   0xc   : > { %p46_p3 = scmp.ne.s32.totalorder %s1135_s19, %s1131_s18  ;;  %p1526_p4 = scmp.eq.s32.totalorder %s1210_s22, 0 }
   0xd   : > { %s1226_s27 = scalar_select %p31_p1, %s1139_s20, %s33_s25  }
   0xe   : > { %p1228_p5 = por %p41_p2, %p40_p0  ;;  %p1234_p6 = por %p1526_p4, %p46_p3 }
   0xf   : > { %p112_p7 = scmp.eq.s32.totalorder %s1210_s22, 1  ;;  %p118_p8 = scmp.eq.s32.totalorder %s1531_s23, 1 }
  0x10   : > { %s1533_s29 = scalar_select %p1234_p6, 1, 0 }
  0x11   : > { %p745_p9 = scmp.ge.s32.totalorder %s1143_s21, 1  ;;  %p177_p10 = scmp.lt.s32.totalorder %s1143_s21, 3 }
  0x12   : > { %p1243_p11 = por %p112_p7, %p40_p0  ;;  %p1247_p12 = por %p118_p8, %p46_p3 }
  0x13   : > { %p1251_p13 = pnand %p745_p9, %p177_p10  ;;  %s1145_s8 = smov [#allocation5]  }
  0x14   : > { %s1534_s30 = scalar_select %p1243_p11, 1, 0 }
  0x15   : > { %s1535_s6 = scalar_select %p1247_p12, 1, 0 }
  0x16   : > { %s1536_s7 = scalar_select %p1251_p13, 1, 0 }
  0x17   : > { %p853_p2 = pneg %p1251_p13  ;;  %s190_s9 = sshll.u32 %s1145_s8, 4  ;;  %s191_s9 = int_to_ptr.vmem [resolvable:$true] %s190_s9 }
  0x18   : > { %p876_p4 = scmp.lt.s32.totalorder %s1143_s21, 2  ;;  %p1537_p0 = scmp.eq.s32.totalorder %s1210_s22, 0 }
  0x19   : > { %s1146_s12 = smov [#allocation7]   ;;  %s927_s16 = scalar_lea.hbm %s1521_s1, 64 }
  0x1a   : > { %p1261_p7 = pnand %p853_p2, %p1537_p0  ;;  %p1267_p3 = pnand %p876_p4, %p1228_p5 }
  0x1b   : > { %s201_s13 = sshll.u32 %s1146_s12, 4  ;;  %p928_p8 = scmp.ne.s32.totalorder %s1521_s1, %s927_s16  ;;  %s1271_s13 = int_to_ptr.vmem [resolvable:$true] %s201_s13 }
  0x1c   : > { %s1539_s11 = scalar_select %p1267_p3, 1, 0 }
  0x1d   : > { %p929_p9 = pneg %p1261_p7  ;;  %p934_p10 = scmp.lt.u32.totalorder %s927_s16, %s1521_s1 }
  0x1f   : > { %p930_p4 = pnand %p929_p9, %p928_p8 }
  0x21   : > { %p931_p5 = pneg %p930_p4 }
  0x23   : > { %p936_p2 = pnand %p934_p10, %p931_p5 }
  0x25   : > { %939 = shalt.err (!%p936_p2)
}
  0x26   : > { %s940_s8 = scalar_lea.vmem %s191_s9, 64  ;;  %p948_p11 = scmp.lt.s32.totalorder %s191_s9, %s191_s9 }
  0x27   : > { %p941_p0 = scmp.ne.s32.totalorder %s191_s9, %s940_s8  ;;  %p949_p6 = scmp.lt.s32.totalorder %s940_s8, %s940_s8 }
  0x29   : > { %p943_p1 = pnand %p941_p0, %p929_p9  ;;  %p950_p13 = por %p949_p6, %p948_p11 }
  0x2b   : > { %p944_p12 = pneg %p943_p1 }
  0x2d   : > { %p951_p3 = pnand %p950_p13, %p944_p12 }
  0x2f   : > { %954 = shalt.err (!%p951_p3)
}
  0x30   : > { %856 = dma.hbm_to_vmem [thread:$0]  (!%p1261_p7), %s1521_s1, 64, %s191_s9, [#allocation6]  }
  0x31   : > { %s212_s15 = sand.u32 1, %s1139_s20   ;;  %s955_s25 = scalar_lea.hbm %s1522_s2, 16 }
  0x32   : > { %p956_p1 = scmp.ne.s32.totalorder %s1522_s2, %s955_s25  ;;  %p962_p12 = scmp.lt.u32.totalorder %s955_s25, %s1522_s2 }
  0x34   : > { %p958_p6 = pnand %p956_p1, %p929_p9 }
  0x36   : > { %p959_p11 = pneg %p958_p6 }
  0x38   : > { %p964_p13 = pnand %p962_p12, %p959_p11 }
  0x3a   : > { %967 = shalt.err (!%p964_p13)
}
  0x3b   : > { %s968_s9 = scalar_lea.vmem %s1271_s13, 16  ;;  %s975_s12 = scalar_lea.vmem %s1271_s13, 32 }
  0x3c   : > { %p969_p3 = scmp.ne.s32.totalorder %s1271_s13, %s968_s9  ;;  %p976_p5 = scmp.lt.s32.totalorder %s1271_s13, %s1271_s13 }
  0x3d   : > { %p977_p10 = scmp.lt.s32.totalorder %s975_s12, %s968_s9 }
  0x3e   : > { %p971_p8 = pnand %p969_p3, %p929_p9 }
  0x3f   : > { %p978_p2 = por %p977_p10, %p976_p5 }
  0x40   : > { %p972_p4 = pneg %p971_p8 }
  0x42   : > { %p979_p0 = pnand %p978_p2, %p972_p4 }
  0x44   : > { %982 = shalt.err (!%p979_p0)
}
  0x45   : > { %859 = dma.hbm_to_vmem [thread:$0]  (!%p1261_p7), %s1522_s2, 16, %s1271_s13, [#allocation6]  }
  0x46   : > { %s749_s16 = sshll.u32 %s212_s15, 5  ;;  %s784_s17 = sshll.u32 %s1143_s21, 9 }
  0x47   : > { %s1326_s28 = scalar_lea.hbm %s1520_s0, %s784_s17  ;;  %s216_s10 = scalar_lea.vmem [#allocation2], %s749_s16 }
  0x48   : > { %s223_s8 = sshll.u32 %s216_s10, 4  ;;  %s1330_s9 = scalar_lea.sflag [#allocation3], %s212_s15  ;;  %s1328_s8 = int_to_ptr.vmem [resolvable:$true] %s223_s8 }
  0x49   : > { %s983_s12 = scalar_lea.hbm %s1326_s28, 512  ;;  %p1540_p7 = scmp.ne.s32.totalorder %s1539_s11, 0 }
  0x4a   : > { %p984_p9 = scmp.ne.s32.totalorder %s1326_s28, %s983_s12  ;;  %s988_s14 = scalar_lea.hbm %s1520_s0, 1024 }
  0x4b   : > { %p985_p1 = pneg %p1540_p7  ;;  %p989_p12 = scmp.lt.u32.totalorder %s1326_s28, %s1520_s0 }
  0x4c   : > { %p990_p13 = scmp.lt.u32.totalorder %s988_s14, %s983_s12  ;;  %p992_p8 = scmp.lt.u32.totalorder %s983_s12, %s1326_s28 }
  0x4d   : > { %p986_p6 = pnand %p985_p1, %p984_p9 }
  0x4e   : > { %p991_p3 = por %p990_p13, %p989_p12 }
  0x4f   : > { %p987_p11 = pneg %p986_p6 }
  0x50   : > { %p993_p4 = por %p992_p8, %p991_p3 }
  0x52   : > { %p994_p5 = pnand %p993_p4, %p987_p11 }
  0x54   : > { %997 = shalt.err (!%p994_p5)
}
  0x55   : > { %s998_s15 = scalar_lea.vmem %s1328_s8, 512  ;;  %s1147_s16 = smov [#allocation2]  }
  0x56   : > { %p999_p10 = scmp.ne.s32.totalorder %s1328_s8, %s998_s15  ;;  %s1003_s26 = sshll.u32 %s1147_s16, 4  ;;  %s1004_s26 = int_to_ptr.vmem [resolvable:$false] %s1003_s26 }
  0x57   : > { %s1005_s10 = scalar_lea.vmem %s1004_s26, 1024  ;;  %p1006_p9 = scmp.lt.s32.totalorder %s1328_s8, %s1004_s26 }
  0x58   : > { %p1001_p2 = pnand %p999_p10, %p985_p1  ;;  %p1007_p6 = scmp.lt.s32.totalorder %s1005_s10, %s998_s15 }
  0x5a   : > { %p1002_p0 = pneg %p1001_p2  ;;  %p1008_p12 = por %p1007_p6, %p1006_p9 }
  0x5c   : > { %p1009_p13 = pnand %p1008_p12, %p1002_p0 }
  0x5e   : > { %1012 = shalt.err (!%p1009_p13)
}
  0x5f   : > { %s1148_s12 = smov 64   ;;  %s1149_s13 = smov 4  }
  0x60   : > { %863 = dma.hbm_to_vmem [thread:$0]  (!%p1540_p7), %s1326_s28, 512, %s1328_s8, %s1330_s9, %s1148_s12, %s1148_s12, %s1149_s13  }
  0x61   : > { %p1541_p1 = scmp.ne.s32.totalorder %s1536_s7, 0 }
  0x62   : > { %s1361_s23 = sand.u32 (!%p1541_p1), 1, %s1135_s19   ;;  %p1542_p11 = scmp.ne.s32.totalorder (!%p1541_p1), %s1533_s29, 0 }
  0x63   : > { %235 = sbr.rel (%p1541_p1) target bundleno = 614 (0x266), region = 32  ;;  %s753_s14 = sshll.u32 (!%p1541_p1), %s1361_s23, 5 }
  0x64   : > { %s238_s17 = scalar_lea.sflag (!%p1541_p1), [#allocation3], %s1361_s23  ;;  %s241_s25 = scalar_lea.vmem (!%p1541_p1), [#allocation2], %s753_s14 }
  0x6a   : > { %1114 = dma.done.wait (%p1542_p11), %s238_s17, 512  }
  0x6b   : > { %1116 = vsyncadd (%p1542_p11), %s238_s17, 4294966784  ;;  %p1543_p7 = scmp.eq.s32.totalorder %s1210_s22, 0 }
  0x6d   : > { %1118 = dma.done.wait (%p1543_p7), [#allocation6], 80   ;;  %p1544_p3 = pmov %p1543_p7 }
  0x6e   : > { %vm335_vm0 = vcmask 1043456   ;;  %vm322_vm1 = vcmask 64512   ;;  %v294_v0 = vld [vmem:[#allocation5] sm:$0xf]  ;;  %v924_v3 = vld [vmem:[%s241_s25 + $0x10] sm:$0xff]   ;;  %v925_v4 = vld [vmem:[%s241_s25 + $0x8] sm:$0xff]  }
  0x6f   : > { %1120 = vsyncadd (%p1544_p3), [#allocation6], 4294967216  ;;  %835 = vmatprep.subr.msk.bf16.mxu0 %vm335_vm0, %v294_v0  ;;  %836 = vmatprep.subr.msk.bf16.mxu1 %vm335_vm0, %v294_v0  ;;  %v337_v1 = vsel %vm335_vm0, %v294_v0, 0  ;;  %v923_v2 = vld [vmem:[%s241_s25] sm:$0xff]   ;;  %v926_v5 = vld [vmem:[%s241_s25 + $0x18] sm:$0xff]   ;;  %s1150_s29 = smov 123  }
  0x70   : > { %824 = vmatpush3.bf16.msra.mxu0 %v337_v1  ;;  %834 = vmatpush3.bf16.msra.mxu1 %v337_v1  ;;  %v758_v6 = vld [vmem:[#allocation7] ss:$0 sm:$0xff]  ;;  %s1377_s7 = scalar_lea.vmem [#allocation8], %s753_s14  ;;  %s1151_s11 = smov 124   ;;  %vm476_vm2 = vcmask 7168  }
  0x71   : > { %825 = vmatprep.mubr.msk.bf16.mxu0 %vm322_vm1, %v923_v2  ;;  %829 = vmatprep.mubr.msk.bf16.mxu1 %vm322_vm1, %v924_v3  ;;  %s566_s28 = sshll.u32 %s1377_s7, 4  ;;  %s757_s8 = sshll.u32 %s1361_s23, 6  ;;  %s1388_s28 = int_to_ptr.vmem [resolvable:$true] %s566_s28 }
  0x72   : > { %s793_s9 = sshll.u32 %s1210_s22, 9  ;;  %s544_s10 = scalar_lea.sflag [#allocation4], %s1361_s23 }
  0x73   : > { %826 = vmatmul.mubr.msk.bf16.vlgmr.msra.gmra.mrb[0].mxu0 %vm322_vm1, %v925_v4  ;;  %830 = vmatmul.mubr.msk.bf16.vlgmr.msra.gmra.mrb[0].mxu1 %vm322_vm1, %v926_v5  ;;  %s1397_s26 = scalar_lea.hbm %s1523_s3, %s793_s9  ;;  %s1013_s12 = scalar_lea.vmem %s1388_s28, 512 }
  0x74   : > { %p1014_p8 = scmp.ne.s32.totalorder %s1388_s28, %s1013_s12  ;;  %p1545_p4 = scmp.ne.s32.totalorder %s1534_s30, 0 }
  0x75   : > { %s1152_s13 = smov [#allocation8]  }
  0x76   : > { %p1015_p5 = pnand %p1014_p8, %p1545_p4  ;;  %s1017_s14 = sshll.u32 %s1152_s13, 4  ;;  %s1018_s14 = int_to_ptr.vmem [resolvable:$false] %s1017_s14 }
  0x77   : > { %s1019_s17 = scalar_lea.vmem %s1018_s14, 1024  ;;  %p1020_p2 = scmp.lt.s32.totalorder %s1388_s28, %s1018_s14 }
  0x78   : > { %p1016_p10 = pneg %p1015_p5  ;;  %p1021_p0 = scmp.lt.s32.totalorder %s1019_s17, %s1013_s12 }
  0x7a   : > { %p1022_p9 = por %p1021_p0, %p1020_p2 }
  0x7c   : > { %p1023_p6 = pnand %p1022_p9, %p1016_p10 }
 0x146   : > { %v827_v7 = vpop.f32.mrb[0].mxu0  ;;  %v831_v9 = vpop.f32.mrb[0].mxu1 }
 0x147   : > { %v382_v8 = vadd.f32 %v827_v7, %v758_v6  ;;  %v373_v10 = vpop.f32.mrb[1].mxu0  ;;  %v398_v11 = vadd.f32 %v831_v9, %v758_v6  ;;  %v389_v13 = vpop.f32.mrb[1].mxu1 }
 0x148   : > { %v374_v12 = vadd.f32 %v758_v6, %v373_v10  ;;  %v828_v14 = vpop.f32.mrb[2].mxu0  ;;  %v832_v16 = vpop.f32.mrb[2].mxu1  ;;  %v390_v21 = vadd.f32 %v758_v6, %v389_v13 }
 0x149   : > { %v385_v15 = vadd.f32 %v828_v14, %v758_v6  ;;  %489 = vrot.lane.b32.xlu1 %v382_v8, %s1150_s29  ;;  %v376_v17 = vpop.f32.mrb[3].mxu0  ;;  %v401_v18 = vadd.f32 %v832_v16, %v758_v6  ;;  %497 = vrot.lane.b32.xlu0 %v398_v11, %s1150_s29  ;;  %v392_v19 = vpop.f32.mrb[3].mxu1 }
 0x14a   : > { %v377_v20 = vadd.f32 %v758_v6, %v376_v17  ;;  %v393_v23 = vadd.f32 %v758_v6, %v392_v19 }
 0x14b   : > { %v803_v22 = vpack.c.bf16 %v385_v15, %v382_v8  ;;  %v813_v24 = vpack.c.bf16 %v401_v18, %v398_v11 }
 0x14c   : > { %v798_v25 = vpack.c.bf16 %v377_v20, %v374_v12  ;;  %v808_v26 = vpack.c.bf16 %v393_v23, %v390_v21 }
 0x14d   : > { %815 = vst [vmem:[%s1377_s7 + $0x8] sm:$0xff] %v803_v22   ;;  %491 = vrot.lane.b32.xlu1 %v385_v15, %s1150_s29  ;;  %817 = vst [vmem:[%s1377_s7 + $0x18] sm:$0xff] %v813_v24   ;;  %485 = vrot.lane.b32.xlu0 %v374_v12, %s1150_s29 }
 0x14e   : > { %799 = vst [vmem:[%s1377_s7] sm:$0xff] %v798_v25   ;;  %816 = vst [vmem:[%s1377_s7 + $0x10] sm:$0xff] %v808_v26  }
 0x151   : > { %495 = vrot.lane.b32.xlu1 %v393_v23, %s1150_s29  ;;  %493 = vrot.lane.b32.xlu0 %v390_v21, %s1150_s29 }
 0x155   : > { %499 = vrot.lane.b32.xlu1 %v401_v18, %s1150_s29  ;;  %487 = vrot.lane.b32.xlu0 %v377_v20, %s1150_s29 }
 0x159   : > { %458 = vrot.lane.b32.xlu1 %v385_v15, %s1151_s11  ;;  %452 = vrot.lane.b32.xlu0 %v374_v12, %s1151_s11 }
 0x15d   : > { %454 = vrot.lane.b32.xlu1 %v377_v20, %s1151_s11  ;;  %456 = vrot.lane.b32.xlu0 %v382_v8, %s1151_s11 }
 0x161   : > { %462 = vrot.lane.b32.xlu1 %v393_v23, %s1151_s11  ;;  %460 = vrot.lane.b32.xlu0 %v390_v21, %s1151_s11 }
 0x165   : > { %466 = vrot.lane.b32.xlu1 %v401_v18, %s1151_s11  ;;  %464 = vrot.lane.b32.xlu0 %v398_v11, %s1151_s11 }
 0x1bb   : > { %v490_v27 = vpop.permute.xlu1 %489  ;;  %v1383_v28 = vpop.permute.xlu0 %497 }
 0x1bf   : > { %v492_v29 = vpop.permute.xlu1 %491  ;;  %v486_v30 = vpop.permute.xlu0 %485 }
 0x1c0   : > { %509 = vxpose.xlu0.b32.start [1/8] (short) (narrow) %v486_v30, 8 }
 0x1c3   : > { %v1386_v31 = vpop.permute.xlu1 %495  ;;  %v494_v32 = vpop.permute.xlu0 %493 }
 0x1c7   : > { %v1391_v33 = vpop.permute.xlu1 %499  ;;  %v488_v34 = vpop.permute.xlu0 %487 }
 0x1c8   : > { %510 = vxpose.xlu0.b32.cont [2/8] (short) (narrow) %v488_v34, 8 }
 0x1c9   : > { %1026 = shalt.err (!%p1023_p6)
}
 0x1ca   : > { %s1027_s25 = scalar_lea.hbm %s1397_s26, 512  ;;  %s1031_s11 = scalar_lea.hbm %s1523_s3, 1024 }
 0x1cb   : > { %p1028_p12 = scmp.ne.s32.totalorder %s1397_s26, %s1027_s25  ;;  %p1032_p11 = scmp.lt.u32.totalorder %s1397_s26, %s1523_s3 }
 0x1cc   : > { %p1033_p7 = scmp.lt.u32.totalorder %s1031_s11, %s1027_s25  ;;  %p1035_p8 = scmp.lt.u32.totalorder %s1027_s25, %s1397_s26 }
 0x1cd   : > { %p1029_p13 = pnand %p1028_p12, %p1545_p4 }
 0x1ce   : > { %p1034_p3 = por %p1033_p7, %p1032_p11 }
 0x1cf   : > { %p1030_p1 = pneg %p1029_p13 }
 0x1d0   : > { %p1036_p5 = por %p1035_p8, %p1034_p3 }
 0x1d2   : > { %p1037_p10 = pnand %p1036_p5, %p1030_p1 }
 0x1d4   : > { %1040 = shalt.err (!%p1037_p10)
}
 0x1d5   : > { %s1153_s16 = smov 64   ;;  %s1154_s12 = smov 4   ;;  %v459_v35 = vpop.permute.xlu1 %458  ;;  %v453_v36 = vpop.permute.xlu0 %452  ;;  %511 = vxpose.xlu0.b32.cont [3/8] (short) (narrow) %v490_v27, 8 }
 0x1d6   : > { %847 = dma.vmem_to_hbm [thread:$0]  (%p1545_p4), %s1388_s28, 512, %s1397_s26, %s544_s10, %s1153_s16, %s1153_s16, %s1154_s12  }
 0x1d7   : > { %s278_s13 = scalar_lea.vmem [#allocation9], %s757_s8  ;;  %s548_s17 = sand.u32 1, %s1210_s22  }
 0x1d8   : > { %480 = vst.msk [vmem:[%s278_s13 + $0x18] sm:$0xff] %vm476_vm2, %v459_v35  ;;  %477 = vst.msk [vmem:[%s278_s13] sm:$0xff] %vm476_vm2, %v453_v36  ;;  %s582_s14 = sshll.u32 %s278_s13, 4  ;;  %s794_s28 = sshll.u32 %s1210_s22, 10  ;;  %s1432_s14 = int_to_ptr.vmem [resolvable:$true] %s582_s14 }
 0x1d9   : > { %v455_v37 = vpop.permute.xlu1 %454  ;;  %v457_v38 = vpop.permute.xlu0 %456  ;;  %512 = vxpose.xlu0.b32.cont [4/8] (short) (narrow) %v492_v29, 8  ;;  %s1438_s10 = scalar_lea.hbm %s1524_s4, %s794_s28  ;;  %s1443_s25 = scalar_lea.sflag [#allocation10], %s548_s17 }
 0x1da   : > { %478 = vst.msk [vmem:[%s278_s13 + $0x8] sm:$0xff] %vm476_vm2, %v455_v37  ;;  %479 = vst.msk [vmem:[%s278_s13 + $0x10] sm:$0xff] %vm476_vm2, %v457_v38  ;;  %s1041_s29 = scalar_lea.vmem %s1432_s14, 1024  ;;  %s1155_s7 = smov [#allocation9]  }
 0x1db   : > { %p1042_p2 = scmp.ne.s32.totalorder %s1432_s14, %s1041_s29  ;;  %s1045_s11 = sshll.u32 %s1155_s7, 4  ;;  %s1046_s11 = int_to_ptr.vmem [resolvable:$false] %s1045_s11 }
 0x1dc   : > { %s1047_s9 = scalar_lea.vmem %s1046_s11, 2048  ;;  %p1048_p6 = scmp.lt.s32.totalorder %s1432_s14, %s1046_s11 }
 0x1dd   : > { %v463_v39 = vpop.permute.xlu1 %462  ;;  %v461_v40 = vpop.permute.xlu0 %460  ;;  %513 = vxpose.xlu0.b32.cont [5/8] (short) (narrow) %v494_v32, 8  ;;  %p1043_p0 = pnand %p1042_p2, %p1545_p4  ;;  %p1049_p12 = scmp.lt.s32.totalorder %s1047_s9, %s1041_s29 }
 0x1de   : > { %482 = vst.msk [vmem:[%s278_s13 + $0x28] sm:$0xff] %vm476_vm2, %v463_v39  ;;  %481 = vst.msk [vmem:[%s278_s13 + $0x20] sm:$0xff] %vm476_vm2, %v461_v40 }
 0x1df   : > { %p1044_p9 = pneg %p1043_p0  ;;  %p1050_p13 = por %p1049_p12, %p1048_p6 }
 0x1e1   : > { %v467_v41 = vpop.permute.xlu1 %466  ;;  %v465_v42 = vpop.permute.xlu0 %464  ;;  %514 = vxpose.xlu0.b32.cont [6/8] (short) (narrow) %v1386_v31, 8  ;;  %p1051_p1 = pnand %p1050_p13, %p1044_p9 }
 0x1e2   : > { %484 = vst.msk [vmem:[%s278_s13 + $0x38] sm:$0xff] %vm476_vm2, %v467_v41  ;;  %483 = vst.msk [vmem:[%s278_s13 + $0x30] sm:$0xff] %vm476_vm2, %v465_v42 }
 0x1e3   : > { %1054 = shalt.err (!%p1051_p1)
}
 0x1e4   : > { %s1055_s15 = scalar_lea.hbm %s1438_s10, 1024  ;;  %s1059_s13 = scalar_lea.hbm %s1524_s4, 2048 }
 0x1e5   : > { %p1056_p11 = scmp.ne.s32.totalorder %s1438_s10, %s1055_s15  ;;  %p1060_p8 = scmp.lt.u32.totalorder %s1438_s10, %s1524_s4 }
 0x1e6   : > { %p1061_p5 = scmp.lt.u32.totalorder %s1059_s13, %s1055_s15  ;;  %p1063_p2 = scmp.lt.u32.totalorder %s1055_s15, %s1438_s10 }
 0x1e7   : > { %p1057_p7 = pnand %p1056_p11, %p1545_p4 }
 0x1e8   : > { %p1062_p10 = por %p1061_p5, %p1060_p8 }
 0x1e9   : > { %p1058_p3 = pneg %p1057_p7 }
 0x1ea   : > { %p1064_p0 = por %p1063_p2, %p1062_p10 }
 0x1ec   : > { %p1065_p9 = pnand %p1064_p0, %p1058_p3 }
 0x1ee   : > { %1068 = shalt.err (!%p1065_p9)
}
 0x1ef   : > { %s1156_s8 = smov 128   ;;  %s1157_s26 = smov 8   ;;  %515 = vxpose.xlu0.b32.cont [7/8] (short) (narrow) %v1383_v28, 8  ;;  %vm541_vm3 = vcmask 516096  }
 0x1f0   : > { %848 = dma.vmem_to_hbm [thread:$0]  (%p1545_p4), %s1432_s14, 1024, %s1438_s10, %s1443_s25, %s1156_s8, %s1156_s8, %s1157_s26  }
 0x1f1   : > { %s284_s29 = scalar_lea.vmem [#allocation11], %s1361_s23  ;;  %s781_s11 = sshll.u32 %s1210_s22, 4 }
 0x1f2   : > { %s598_s7 = sshll.u32 %s284_s29, 4  ;;  %s1474_s16 = scalar_lea.hbm %s1525_s5, %s781_s11  ;;  %s1476_s7 = int_to_ptr.vmem [resolvable:$true] %s598_s7 }
 0x1f3   : > { %516 = vxpose.xlu0.b32.end [8/8] (short) (narrow) %v1391_v33, 8  ;;  %s1069_s14 = scalar_lea.vmem %s1476_s7, 16  ;;  %s1158_s23 = smov [#allocation11]  }
 0x1f4   : > { %p1070_p6 = scmp.ne.s32.totalorder %s1476_s7, %s1069_s14  ;;  %s1073_s22 = sshll.u32 %s1158_s23, 4  ;;  %s1074_s22 = int_to_ptr.vmem [resolvable:$false] %s1073_s22 }
 0x1f5   : > { %s1075_s10 = scalar_lea.vmem %s1074_s22, 32  ;;  %p1076_p1 = scmp.lt.s32.totalorder %s1476_s7, %s1074_s22 }
 0x1f6   : > { %p1071_p12 = pnand %p1070_p6, %p1545_p4  ;;  %p1077_p11 = scmp.lt.s32.totalorder %s1075_s10, %s1069_s14 }
 0x1f8   : > { %p1072_p13 = pneg %p1071_p12  ;;  %p1078_p7 = por %p1077_p11, %p1076_p1 }
 0x1fa   : > { %p1079_p3 = pnand %p1078_p7, %p1072_p13 }
 0x257   : > { %v525_v43 = vpop.trf.xlu0 }
 0x258   : > { %542 = vst.msk [vmem:[%s284_s29] sm:$0x1] %vm541_vm3, %v525_v43 }
 0x259   : > { %1082 = shalt.err (!%p1079_p3)
}
 0x25a   : > { %s1083_s12 = scalar_lea.hbm %s1474_s16, 16  ;;  %s1087_s28 = scalar_lea.hbm %s1525_s5, 32 }
 0x25b   : > { %p1084_p8 = scmp.ne.s32.totalorder %s1474_s16, %s1083_s12  ;;  %p1088_p2 = scmp.lt.u32.totalorder %s1474_s16, %s1525_s5 }
 0x25c   : > { %p1089_p0 = scmp.lt.u32.totalorder %s1087_s28, %s1083_s12  ;;  %p1091_p6 = scmp.lt.u32.totalorder %s1083_s12, %s1474_s16 }
 0x25d   : > { %p1085_p5 = pnand %p1084_p8, %p1545_p4 }
 0x25e   : > { %p1090_p9 = por %p1089_p0, %p1088_p2 }
 0x25f   : > { %p1086_p10 = pneg %p1085_p5 }
 0x260   : > { %p1092_p12 = por %p1091_p6, %p1090_p9 }
 0x262   : > { %p1093_p13 = pnand %p1092_p12, %p1086_p10 }
 0x264   : > { %1096 = shalt.err (!%p1093_p13)
}
 0x265   : > { %849 = dma.vmem_to_hbm [thread:$0]  (%p1545_p4), %s1476_s7, 16, %s1474_s16, %s1443_s25  }
 0x266 PF: > { %s610_s29 = sand.u32 1, %s1131_s18   ;;  %p1546_p1 = scmp.ne.s32.totalorder %s1535_s6, 0 }
 0x267   : > { %p1547_p11 = scmp.ge.s32.totalorder %s1143_s21, 2  ;;  %s611_s11 = scalar_lea.sflag [#allocation4], %s610_s29 }
 0x269   : > { %p865_p7 = pnand %p1547_p11, %p1546_p1 }
 0x26b   : > { %1122 = dma.done.wait (!%p865_p7), %s611_s11, 512  }
 0x26c   : > { %1124 = vsyncadd (!%p865_p7), %s611_s11, 4294966784  ;;  %s1548_s9 = sadd.s32 4294967294, %s1143_s21  }
 0x26d   : > { %s619_s15 = sand.u32 1, %s1548_s9  }
 0x26e   : > { %s620_s14 = scalar_lea.sflag [#allocation10], %s619_s15 }
 0x26f   : > { %1126 = dma.done.wait (!%p865_p7), %s620_s14, 1040  }
 0x270   : > { %1128 = vsyncadd (!%p865_p7), %s620_s14, 4294966256  ;;  %p23_p4 = scmp.ge.s32.totalorder %s1214_s24, 4   ;;  %s1549_s18 = smov %s1135_s19 }
 0x271   : > { %s1550_s19 = smov %s1139_s20  ;;  %s1551_s20 = smov %s1226_s27 }
 0x272   : > { %s1552_s21 = smov %s1214_s24  ;;  %25 = sbr.rel (!%p23_p4) target bundleno = 8 (0x8), region = 117 }
 0x279   :  { %633 = vsyncpa [#allocation3], 1 }
 0x27a   :  { %635 = vsyncpa [#allocation3 + $0x1], 1 }
 0x27b   :  { %636 = vsyncpa [#allocation6], 1 }
 0x27c   :  { %637 = vsyncpa [#allocation4], 1 }
 0x27d   :  { %639 = vsyncpa [#allocation4 + $0x1], 1 }
 0x27e   :  { %640 = vsyncpa [#allocation10], 1 }
 0x27f   :  { %642 = vsyncpa [#allocation10 + $0x1], 1 }

</bundles_post_ra>
